<compile_context>
chip_gen: v6e
topology: v6e:2x2x1
jax: 0.10.0
libtpu: 0.0.40
codegen_flags: <defaults>
</compile_context>

<pallas_src>
import functools
import math

import jax
import jax.numpy as jnp
from jax.experimental import pallas as pl
from jax.experimental.pallas import tpu as pltpu


def _flash_attention_kernel(q_ref, k_ref, v_ref, o_ref, m_ref, l_ref, acc_ref, *, scale):
    """One (batch, q-tile, kv-tile) grid step.

    q_ref: (1, tq, D)   k_ref: (1, tk, D)   v_ref: (1, tk, Dv)
    o_ref: (1, tq, Dv)  m/l:   (tq, 1) f32  acc:   (tq, Dv) f32
    """
    kv = pl.program_id(2)

    @pl.when(kv == 0)
    def _init():
        m_ref[...] = jnp.full(m_ref.shape, -jnp.inf, dtype=m_ref.dtype)
        l_ref[...] = jnp.zeros(l_ref.shape, dtype=l_ref.dtype)
        acc_ref[...] = jnp.zeros(acc_ref.shape, dtype=acc_ref.dtype)

    q = q_ref[0]  # native dtype -> full-rate MXU (accumulation is f32 below)
    k = k_ref[0]
    v = v_ref[0]

    # QK^T as a last-dim contraction: K is consumed in its natural (tk, D)
    # layout, no XLU transpose / VMEM copy.
    s = jax.lax.dot_general(
        q, k, (((1,), (1,)), ((), ())),
        preferred_element_type=jnp.float32) * scale              # (tq, tk) f32

    m_prev = m_ref[...]
    m_new = jnp.maximum(m_prev, jnp.max(s, axis=-1, keepdims=True))
    alpha = jnp.exp(m_prev - m_new)                               # rescale factor
    p = jnp.exp(s - m_new)                                        # unnormalized probs, f32

    l_ref[...] = alpha * l_ref[...] + jnp.sum(p, axis=-1, keepdims=True)
    acc_ref[...] = alpha * acc_ref[...] + jnp.dot(
        p.astype(v.dtype), v, preferred_element_type=jnp.float32)
    m_ref[...] = m_new

    @pl.when(kv == pl.num_programs(2) - 1)
    def _finalize():
        # Normalize once per Q tile; approx reciprocal runs on the EUP slot.
        inv_l = pl.reciprocal(l_ref[...], approx=True)
        o_ref[0] = (acc_ref[...] * inv_l).astype(o_ref.dtype)

    # TODO(synk): SCORE_SAVER.save(scores) is a host-side visualization hook;
    # the full (Sq, Sk) score matrix is intentionally never materialized here.


def _pick_tile(n, preferred):
    """Largest tile <= preferred that evenly divides n and keeps the sublane
    dim legal (multiple of 8, or the full extent)."""
    if n <= preferred:
        return n
    if n % preferred == 0:
        return preferred
    for t in range(min(preferred, n), 0, -1):
        if n % t == 0 and t % 8 == 0:
            return t
    return n


def scaled_dot_attention(q, k, v, *, block_q=128, block_k=256):
    """q: (B, Sq, D), k: (B, Sk, D), v: (B, Sk, Dv) -> (B, Sq, Dv)."""
    B, Sq, D = q.shape
    Bk, Sk, Dk = k.shape
    Bv, Skv, Dv = v.shape
    assert D == Dk and B == Bk == Bv and Sk == Skv

    tq = _pick_tile(Sq, block_q)
    tk = _pick_tile(Sk, block_k)
    grid = (B, Sq // tq, Sk // tk)

    scale = 1.0 / math.sqrt(D)
    kernel = functools.partial(_flash_attention_kernel, scale=scale)

    in_bytes = sum(x.size * x.dtype.itemsize for x in (q, k, v))
    out_bytes = B * Sq * Dv * jnp.dtype(q.dtype).itemsize
    cost = pl.CostEstimate(
        flops=2 * B * Sq * Sk * (D + Dv),
        transcendentals=B * Sq * Sk,
        bytes_accessed=in_bytes + out_bytes,
    )

    return pl.pallas_call(
        kernel,
        out_shape=jax.ShapeDtypeStruct((B, Sq, Dv), q.dtype),
        grid_spec=pltpu.PrefetchScalarGridSpec(
            num_scalar_prefetch=0,
            grid=grid,
            in_specs=[
                pl.BlockSpec((1, tq, D), lambda b, qi, ki: (b, qi, 0)),
                pl.BlockSpec((1, tk, D), lambda b, qi, ki: (b, ki, 0)),
                pl.BlockSpec((1, tk, Dv), lambda b, qi, ki: (b, ki, 0)),
            ],
            out_specs=pl.BlockSpec((1, tq, Dv), lambda b, qi, ki: (b, qi, 0)),
            scratch_shapes=[
                pltpu.VMEM((tq, 1), jnp.float32),    # running row max m
                pltpu.VMEM((tq, 1), jnp.float32),    # running denominator l
                pltpu.VMEM((tq, Dv), jnp.float32),   # running output accumulator
            ],
        ),
        compiler_params=pltpu.CompilerParams(
            dimension_semantics=("parallel", "parallel", "arbitrary"),
            vmem_limit_bytes=48 * 1024 * 1024,
        ),
        cost_estimate=cost,
    )(q, k, v)


def _reference(q, k, v):
    d_k = q.shape[-1]
    qf, kf, vf = (x.astype(jnp.float32) for x in (q, k, v))
    scores = jnp.einsum("bqd,bkd->bqk", qf, kf) / jnp.sqrt(jnp.float32(d_k))
    weights = jax.nn.softmax(scores, axis=-1)
    return jnp.einsum("bqk,bkd->bqd", weights, vf).astype(q.dtype)


if __name__ == "__main__":
    key = jax.random.PRNGKey(0)
    k1, k2, k3, k4, k5, k6 = jax.random.split(key, 6)

    # Small shapes consistent with the module (d_model = d_k = d_v = 32).
    B, Sq, Sk, D = 2, 8, 8, 32
    q = jax.random.normal(k1, (B, Sq, D), dtype=jnp.float32)
    k = jax.random.normal(k2, (B, Sk, D), dtype=jnp.float32)
    v = jax.random.normal(k3, (B, Sk, D), dtype=jnp.float32)

    out = jax.block_until_ready(scaled_dot_attention(q, k, v))
    ref = _reference(q, k, v)
    assert out.shape == (B, Sq, D)
    assert jnp.allclose(out, ref, atol=5e-3, rtol=5e-3), "mismatch vs reference (small)"

    # Multi-tile case exercising the online-softmax accumulation across key tiles.
    B2, Sq2, Sk2, D2 = 2, 256, 512, 64
    q2 = jax.random.normal(k4, (B2, Sq2, D2), dtype=jnp.float32)
    k2_ = jax.random.normal(k5, (B2, Sk2, D2), dtype=jnp.float32)
    v2 = jax.random.normal(k6, (B2, Sk2, D2), dtype=jnp.float32)

    out2 = jax.block_until_ready(scaled_dot_attention(q2, k2_, v2))
    ref2 = _reference(q2, k2_, v2)
    assert out2.shape == (B2, Sq2, D2)
    assert jnp.allclose(out2, ref2, atol=5e-3, rtol=5e-3), "mismatch vs reference (tiled)"

    print("KERNEL_OK")
</pallas_src>

<mosaic_0001>
module attributes {stable_mosaic.version = 11 : i64} {
  func.func @_flash_attention_kernel(%arg0: i32, %arg1: i32, %arg2: i32, %arg3: memref<1x8x32xf32, #tpu.memory_space<vmem>>, %arg4: memref<1x8x32xf32, #tpu.memory_space<vmem>>, %arg5: memref<1x8x32xf32, #tpu.memory_space<vmem>>, %arg6: memref<1x8x32xf32, #tpu.memory_space<vmem>>, %arg7: memref<8x1xf32, #tpu.memory_space<vmem>>, %arg8: memref<8x1xf32, #tpu.memory_space<vmem>>, %arg9: memref<8x32xf32, #tpu.memory_space<vmem>>) attributes {dimension_semantics = [#tpu.dimension_semantics<parallel>, #tpu.dimension_semantics<parallel>, #tpu.dimension_semantics<arbitrary>], iteration_bounds = array<i64: 2, 1, 1>, scalar_prefetch = 0 : i64, scratch_operands = 3 : i64, tpu.core_type = #tpu.core_type<tc>, window_params = [{transform_indices = @transform_0, window_bounds = array<i64: 1, 8, 32>}, {transform_indices = @transform_1, window_bounds = array<i64: 1, 8, 32>}, {transform_indices = @transform_2, window_bounds = array<i64: 1, 8, 32>}, {transform_indices = @transform_3, window_bounds = array<i64: 1, 8, 32>}]} {
    %c0_i32 = arith.constant 0 : i32
    %0 = arith.cmpi eq, %arg2, %c0_i32 : i32
    %1 = arith.extui %0 : i1 to i32
    %c0_i32_0 = arith.constant 0 : i32
    %2 = arith.cmpi ne, %1, %c0_i32_0 : i32
    scf.if %2 {
      %cst_27 = arith.constant 0xFF800000 : f32
      %37 = vector.broadcast %cst_27 : f32 to vector<8x1xf32>
      %c0_28 = arith.constant 0 : index
      %c0_29 = arith.constant 0 : index
      %38 = vector.load %arg7[%c0_28, %c0_29] : memref<8x1xf32, #tpu.memory_space<vmem>>, vector<8x1xf32>
      tpu.vector_store %arg7[%c0_28, %c0_29], %37 {strides = array<i32>} : memref<8x1xf32, #tpu.memory_space<vmem>>, vector<8x1xf32>,
      %cst_30 = arith.constant 0.000000e+00 : f32
      %39 = vector.broadcast %cst_30 : f32 to vector<8x1xf32>
      %c0_31 = arith.constant 0 : index
      %c0_32 = arith.constant 0 : index
      %40 = vector.load %arg8[%c0_31, %c0_32] : memref<8x1xf32, #tpu.memory_space<vmem>>, vector<8x1xf32>
      tpu.vector_store %arg8[%c0_31, %c0_32], %39 {strides = array<i32>} : memref<8x1xf32, #tpu.memory_space<vmem>>, vector<8x1xf32>,
      %cst_33 = arith.constant 0.000000e+00 : f32
      %41 = vector.broadcast %cst_33 : f32 to vector<8x32xf32>
      %c0_34 = arith.constant 0 : index
      %c0_35 = arith.constant 0 : index
      %42 = vector.load %arg9[%c0_34, %c0_35] : memref<8x32xf32, #tpu.memory_space<vmem>>, vector<8x32xf32>
      tpu.vector_store %arg9[%c0_34, %c0_35], %41 {strides = array<i32>} : memref<8x32xf32, #tpu.memory_space<vmem>>, vector<8x32xf32>,
    } else {
    }
    %c0 = arith.constant 0 : index
    %c0_1 = arith.constant 0 : index
    %c0_2 = arith.constant 0 : index
    %3 = vector.load %arg3[%c0, %c0_1, %c0_2] : memref<1x8x32xf32, #tpu.memory_space<vmem>>, vector<1x8x32xf32>
    %4 = vector.shape_cast %3 : vector<1x8x32xf32> to vector<8x32xf32>
    %c0_3 = arith.constant 0 : index
    %c0_4 = arith.constant 0 : index
    %c0_5 = arith.constant 0 : index
    %5 = vector.load %arg4[%c0_3, %c0_4, %c0_5] : memref<1x8x32xf32, #tpu.memory_space<vmem>>, vector<1x8x32xf32>
    %6 = vector.shape_cast %5 : vector<1x8x32xf32> to vector<8x32xf32>
    %c0_6 = arith.constant 0 : index
    %c0_7 = arith.constant 0 : index
    %c0_8 = arith.constant 0 : index
    %7 = vector.load %arg5[%c0_6, %c0_7, %c0_8] : memref<1x8x32xf32, #tpu.memory_space<vmem>>, vector<1x8x32xf32>
    %8 = vector.shape_cast %7 : vector<1x8x32xf32> to vector<8x32xf32>
    %cst = arith.constant dense<0.000000e+00> : vector<8x8xf32>
    %9 = tpu.matmul %4, %6, %cst {dimension_numbers = #tpu.dot_dimension_numbers<[1], [1], [0], [0], [0, 0, 1, 0], [], []>} : vector<8x32xf32>, vector<8x32xf32>, vector<8x8xf32> -> vector<8x8xf32>
    %cst_9 = arith.constant 0.176776692 : f32
    %10 = vector.broadcast %cst_9 : f32 to vector<8x8xf32>
    %11 = arith.mulf %9, %10 : vector<8x8xf32>
    %c0_10 = arith.constant 0 : index
    %c0_11 = arith.constant 0 : index
    %12 = vector.load %arg7[%c0_10, %c0_11] : memref<8x1xf32, #tpu.memory_space<vmem>>, vector<8x1xf32>
    %cst_12 = arith.constant dense<0xFF800000> : vector<8xf32>
    %13 = vector.multi_reduction <maximumf>, %11, %cst_12 [1] : vector<8x8xf32> to vector<8xf32>
    %14 = vector.shape_cast %13 : vector<8xf32> to vector<8x1xf32>
    %15 = arith.maximumf %12, %14 : vector<8x1xf32>
    %16 = arith.subf %12, %15 : vector<8x1xf32>
    %17 = math.exp %16 : vector<8x1xf32>
    %18 = vector.broadcast %15 : vector<8x1xf32> to vector<8x8xf32>
    %19 = arith.subf %11, %18 : vector<8x8xf32>
    %20 = math.exp %19 : vector<8x8xf32>
    %c0_13 = arith.constant 0 : index
    %c0_14 = arith.constant 0 : index
    %21 = vector.load %arg8[%c0_13, %c0_14] : memref<8x1xf32, #tpu.memory_space<vmem>>, vector<8x1xf32>
    %22 = arith.mulf %17, %21 : vector<8x1xf32>
    %cst_15 = arith.constant dense<0.000000e+00> : vector<8xf32>
    %23 = vector.multi_reduction <add>, %20, %cst_15 [1] : vector<8x8xf32> to vector<8xf32>
    %24 = vector.shape_cast %23 : vector<8xf32> to vector<8x1xf32>
    %25 = arith.addf %22, %24 : vector<8x1xf32>
    %c0_16 = arith.constant 0 : index
    %c0_17 = arith.constant 0 : index
    %26 = vector.load %arg8[%c0_16, %c0_17] : memref<8x1xf32, #tpu.memory_space<vmem>>, vector<8x1xf32>
    tpu.vector_store %arg8[%c0_16, %c0_17], %25 {strides = array<i32>} : memref<8x1xf32, #tpu.memory_space<vmem>>, vector<8x1xf32>,
    %c0_18 = arith.constant 0 : index
    %c0_19 = arith.constant 0 : index
    %27 = vector.load %arg9[%c0_18, %c0_19] : memref<8x32xf32, #tpu.memory_space<vmem>>, vector<8x32xf32>
    %28 = vector.broadcast %17 : vector<8x1xf32> to vector<8x32xf32>
    %29 = arith.mulf %28, %27 : vector<8x32xf32>
    %cst_20 = arith.constant dense<0.000000e+00> : vector<8x32xf32>
    %30 = tpu.matmul %20, %8, %cst_20 {dimension_numbers = #tpu.dot_dimension_numbers<[1], [0], [0], [1], [0, 0, 1, 1], [], []>} : vector<8x8xf32>, vector<8x32xf32>, vector<8x32xf32> -> vector<8x32xf32>
    %31 = arith.addf %29, %30 : vector<8x32xf32>
    %c0_21 = arith.constant 0 : index
    %c0_22 = arith.constant 0 : index
    %32 = vector.load %arg9[%c0_21, %c0_22] : memref<8x32xf32, #tpu.memory_space<vmem>>, vector<8x32xf32>
    tpu.vector_store %arg9[%c0_21, %c0_22], %31 {strides = array<i32>} : memref<8x32xf32, #tpu.memory_space<vmem>>, vector<8x32xf32>,
    %c0_23 = arith.constant 0 : index
    %c0_24 = arith.constant 0 : index
    %33 = vector.load %arg7[%c0_23, %c0_24] : memref<8x1xf32, #tpu.memory_space<vmem>>, vector<8x1xf32>
    tpu.vector_store %arg7[%c0_23, %c0_24], %15 {strides = array<i32>} : memref<8x1xf32, #tpu.memory_space<vmem>>, vector<8x1xf32>,
    %c0_i32_25 = arith.constant 0 : i32
    %34 = arith.cmpi eq, %arg2, %c0_i32_25 : i32
    %35 = arith.extui %34 : i1 to i32
    %c0_i32_26 = arith.constant 0 : i32
    %36 = arith.cmpi ne, %35, %c0_i32_26 : i32
    scf.if %36 {
      %c0_27 = arith.constant 0 : index
      %c0_28 = arith.constant 0 : index
      %37 = vector.load %arg8[%c0_27, %c0_28] : memref<8x1xf32, #tpu.memory_space<vmem>>, vector<8x1xf32>
      %38 = tpu.reciprocal %37 {approx = true} : vector<8x1xf32> -> vector<8x1xf32>
      %c0_29 = arith.constant 0 : index
      %c0_30 = arith.constant 0 : index
      %39 = vector.load %arg9[%c0_29, %c0_30] : memref<8x32xf32, #tpu.memory_space<vmem>>, vector<8x32xf32>
      %40 = vector.broadcast %38 : vector<8x1xf32> to vector<8x32xf32>
      %41 = arith.mulf %39, %40 : vector<8x32xf32>
      %c0_31 = arith.constant 0 : index
      %c0_32 = arith.constant 0 : index
      %c0_33 = arith.constant 0 : index
      %42 = vector.load %arg6[%c0_31, %c0_32, %c0_33] : memref<1x8x32xf32, #tpu.memory_space<vmem>>, vector<1x8x32xf32>
      %43 = vector.shape_cast %42 : vector<1x8x32xf32> to vector<8x32xf32>
      %44 = vector.shape_cast %41 : vector<8x32xf32> to vector<1x8x32xf32>
      tpu.vector_store %arg6[%c0_31, %c0_32, %c0_33], %44 {strides = array<i32>} : memref<1x8x32xf32, #tpu.memory_space<vmem>>, vector<1x8x32xf32>,
    } else {
    }
    return
  }
  func.func @transform_0(%arg0: i32, %arg1: i32, %arg2: i32) -> (i32, i32, i32) {
    %c0_i32 = arith.constant 0 : i32
    %c0_i32_0 = arith.constant 0 : i32
    return %arg0, %arg1, %c0_i32 : i32, i32, i32
  }
  func.func @transform_1(%arg0: i32, %arg1: i32, %arg2: i32) -> (i32, i32, i32) {
    %c0_i32 = arith.constant 0 : i32
    %c0_i32_0 = arith.constant 0 : i32
    return %arg0, %arg2, %c0_i32 : i32, i32, i32
  }
  func.func @transform_2(%arg0: i32, %arg1: i32, %arg2: i32) -> (i32, i32, i32) {
    %c0_i32 = arith.constant 0 : i32
    %c0_i32_0 = arith.constant 0 : i32
    return %arg0, %arg2, %c0_i32 : i32, i32, i32
  }
  func.func @transform_3(%arg0: i32, %arg1: i32, %arg2: i32) -> (i32, i32, i32) {
    %c0_i32 = arith.constant 0 : i32
    %c0_i32_0 = arith.constant 0 : i32
    return %arg0, %arg1, %c0_i32 : i32, i32, i32
  }
}

</mosaic_0001>

<bundles_post_ra>
// kernel: tpu_custom_call.1
= control target key start
LH: loop header
LB: loop body
LE: loop exit
PB: predicated region body
PF: predicated region fallthrough
CT: control target
= control target key end

     0   :  { %s1169_s0 = inlined_call_operand.hbm [shape: f32[2,8,32], index: 0, kind: input, shape index: {}]   ;;  %s1170_s1 = inlined_call_operand.hbm [shape: f32[2,8,32], index: 1, kind: input, shape index: {}]   ;;  %s1171_s2 = inlined_call_operand.hbm [shape: f32[2,8,32], index: 2, kind: input, shape index: {}]   ;;  %s1172_s3 = inlined_call_operand.hbm [shape: f32[2,8,32], index: 3, kind: output, shape index: {}]  }
   0x1   :  { %1176 = sst [smem:[#allocation17_spill]] %s1170_s1 }
   0x2   :  { %8 = vsyncpa [#allocation6], 0 }
   0x3   :  { %10 = vsyncpa [#allocation6 + $0x1], 0 }
   0x4   :  { %11 = vsyncpa [#allocation9], 0 }
   0x5   :  { %13 = vsyncpa [#allocation9 + $0x1], 0 }
   0x6   :  { %14 = vsyncpa [#allocation7], 0 }
   0x7   :  { %16 = vsyncpa [#allocation7 + $0x1], 0  ;;  %s959_s12 = smov 0   ;;  %s961_s13 = smov 0  }
   0x8   :  { %s963_s14 = smov 0   ;;  %s965_s15 = smov 0  }
   0x9   :  { %s967_s16 = smov 0   ;;  %s969_s17 = smov 0  }
   0xa LB: > { %1177 = sst [smem:[#allocation15_spill]] %s925_s16  ;;  %s990_s18 = sadd.s32 4294967295, %s929_s17   ;;  %s929_s17 = sphi %s969_s17, %s22_s17   ;;  %s925_s16 = sphi %s967_s16, %s1189_s16   ;;  %s921_s15 = sphi %s965_s15, %s1188_s15   ;;  %s917_s14 = sphi %s963_s14, %s1192_s14   ;;  %s913_s13 = sphi %s961_s13, %s1191_s13   ;;  %s909_s12 = sphi %s959_s12, %s1190_s12  }
   0xb   : > { %s642_s19 = sadd.s32 4294967294, %s929_s17   ;;  %s41_s20 = sadd.s32 1, %s925_s16 }
   0xc   : > { %s50_s21 = sadd.s32 1, %s917_s14  ;;  %p43_p0 = scmp.ge.s32.totalorder %s41_s20, 2 }
   0xd   : > { %p57_p1 = scmp.ne.s32.totalorder %s917_s14, %s913_s13  ;;  %p58_p2 = scmp.eq.s32.totalorder %s929_s17, 0 }
   0xe   : > { %p63_p3 = scmp.ne.s32.totalorder %s913_s13, %s909_s12  ;;  %s1194_s20 = smov (%p43_p0, %s41_s20), 0 }
   0xf   : > { %1178 = sst [smem:[#allocation16_spill]] %s1194_s20  ;;  %p1002_p4 = por %p58_p2, %p57_p1 }
  0x10   : > { %p64_p5 = scmp.eq.s32.totalorder %s990_s18, 0  ;;  %s45_s23 = ssub.s32 %s925_s16, %s1194_s20 }
  0x11   : > { %p145_p6 = scmp.eq.s32.totalorder %s990_s18, 1  ;;  %p48_p7 = scmp.eq.s32.totalorder %s45_s23, 0 }
  0x12   : > { %p1010_p8 = por %p64_p5, %p63_p3  ;;  %p151_p10 = scmp.eq.s32.totalorder %s642_s19, 1 }
  0x13   : > { %p1014_p9 = por %p145_p6, %p57_p1  ;;  %p699_p13 = scmp.lt.s32.totalorder %s929_s17, 2 }
  0x14   : > { %s1019_s26 = scalar_select %p48_p7, %s917_s14, %s50_s21  }
  0x15   : > { %p1021_p11 = por %p151_p10, %p63_p3  ;;  %s1173_s28 = sand.u32 1, %s917_s14  }
  0x16   : > { %s1030_s29 = sshll.u32 %s1173_s28, 3  ;;  %s1033_s30 = sshll.u32 %s925_s16, 7 }
  0x17   : > { %p1037_p0 = pnand %p699_p13, %p1002_p4  ;;  %s190_s5 = sand.u32 1, %s929_s17  }
  0x18   : > { %s1184_s1 = sld [smem:[#allocation17_spill]]  ;;  %s194_s9 = scalar_lea.vmem [#allocation8], %s1030_s29 }
  0x19   : > { %s202_s10 = sshll.u32 %s194_s9, 4  ;;  %p651_p1 = scmp.ge.s32.totalorder %s929_s17, 1  ;;  %s203_s10 = int_to_ptr.vmem [resolvable:$true] %s202_s10 }
  0x1a   : > { %p226_p2 = scmp.lt.s32.totalorder %s929_s17, 3  ;;  %s1049_s11 = scalar_lea.sflag [#allocation9], %s190_s5 }
  0x1b   : > { %p763_p3 = pneg %p1037_p0  ;;  %s774_s19 = scalar_lea.vmem %s203_s10, 128 }
  0x1c   : > { %p775_p4 = scmp.ne.s32.totalorder %s203_s10, %s774_s19  ;;  %s931_s21 = smov [#allocation8]  }
  0x1d   : > { %s779_s22 = sshll.u32 %s931_s21, 4  ;;  %s780_s22 = int_to_ptr.vmem [resolvable:$false] %s779_s22 }
  0x1e   : > { %s200_s8 = scalar_lea.hbm %s1184_s1, %s1033_s30  ;;  %p777_p5 = pnand %p775_p4, %p763_p3 }
  0x1f   : > { %s781_s23 = scalar_lea.vmem %s780_s22, 256  ;;  %p782_p7 = scmp.lt.s32.totalorder %s203_s10, %s780_s22 }
  0x20   : > { %p778_p6 = pneg %p777_p5  ;;  %p783_p10 = scmp.lt.s32.totalorder %s781_s23, %s774_s19 }
  0x22   : > { %p784_p13 = por %p783_p10, %p782_p7 }
  0x24   : > { %p785_p12 = pnand %p784_p13, %p778_p6 }
  0x26   : > { %788 = shalt.err (!%p785_p12)
}
  0x27   : > { %691 = dma.hbm_to_vmem [thread:$0]  (!%p1037_p0), %s200_s8, 128, %s203_s10, %s1049_s11  }
  0x28   : > { %p1063_p4 = pnand %p651_p1, %p226_p2  ;;  %s181_s9 = scalar_lea.hbm %s1169_s0, %s1033_s30 }
  0x29   : > { %s175_s19 = scalar_lea.vmem [#allocation5], %s1030_s29  ;;  %s219_s28 = scalar_lea.hbm %s1171_s2, %s1033_s30 }
  0x2a   : > { %s183_s21 = sshll.u32 %s175_s19, 4  ;;  %s1186_s1 = sand.u32 1, %s917_s14   ;;  %s184_s21 = int_to_ptr.vmem [resolvable:$true] %s183_s21 }
  0x2b   : > { %s172_s20 = scalar_lea.sflag [#allocation6], %s1186_s1  ;;  %s802_s8 = scalar_lea.vmem %s184_s21, 128 }
  0x2c   : > { %p803_p12 = scmp.ne.s32.totalorder %s184_s21, %s802_s8  ;;  %s932_s10 = smov [#allocation5]  }
  0x2d   : > { %s807_s16 = sshll.u32 %s932_s10, 4  ;;  %s808_s16 = int_to_ptr.vmem [resolvable:$false] %s807_s16 }
  0x2e   : > { %p805_p1 = pnand %p803_p12, %p763_p3  ;;  %s809_s6 = scalar_lea.vmem %s808_s16, 256 }
  0x2f   : > { %p810_p5 = scmp.lt.s32.totalorder %s184_s21, %s808_s16  ;;  %p811_p6 = scmp.lt.s32.totalorder %s809_s6, %s802_s8 }
  0x30   : > { %p806_p2 = pneg %p805_p1 }
  0x31   : > { %p812_p7 = por %p811_p6, %p810_p5 }
  0x33   : > { %p813_p10 = pnand %p812_p7, %p806_p2 }
  0x35   : > { %816 = shalt.err (!%p813_p10)
}
  0x36   : > { %688 = dma.hbm_to_vmem [thread:$0]  (!%p1037_p0), %s181_s9, 128, %s184_s21, %s172_s20  }
  0x37   : > { %s213_s1 = scalar_lea.vmem [#allocation10], %s1030_s29  ;;  %s933_s22 = smov [#allocation10]  }
  0x38   : > { %s221_s7 = sshll.u32 %s213_s1, 4  ;;  %s835_s16 = sshll.u32 %s933_s22, 4  ;;  %s222_s7 = int_to_ptr.vmem [resolvable:$true] %s221_s7  ;;  %s836_s16 = int_to_ptr.vmem [resolvable:$false] %s835_s16 }
  0x39   : > { %s830_s19 = scalar_lea.vmem %s222_s7, 128  ;;  %s837_s23 = scalar_lea.vmem %s836_s16, 256 }
  0x3a   : > { %p831_p13 = scmp.ne.s32.totalorder %s222_s7, %s830_s19  ;;  %p838_p2 = scmp.lt.s32.totalorder %s222_s7, %s836_s16 }
  0x3b   : > { %p839_p5 = scmp.lt.s32.totalorder %s837_s23, %s830_s19 }
  0x3c   : > { %p833_p12 = pnand %p831_p13, %p763_p3 }
  0x3d   : > { %p840_p6 = por %p839_p5, %p838_p2 }
  0x3e   : > { %p834_p1 = pneg %p833_p12 }
  0x40   : > { %p841_p7 = pnand %p840_p6, %p834_p1 }
  0x42   : > { %844 = shalt.err (!%p841_p7)
}
  0x43   : > { %694 = dma.hbm_to_vmem [thread:$0]  (!%p1037_p0), %s219_s28, 128, %s222_s7, %s1049_s11  }
  0x44   : > { %230 = sbr.rel (%p1063_p4) target bundleno = 863 (0x35f), region = 32  ;;  %s1098_s9 = sand.u32 (!%p1063_p4), 1, %s913_s13  }
  0x45   : > { %s1101_s21 = sshll.u32 (!%p1063_p4), %s1098_s9, 3  ;;  %s233_s4 = scalar_lea.sflag (!%p1063_p4), [#allocation6], %s1098_s9 }
  0x46   : > { %s236_s8 = scalar_lea.vmem (!%p1063_p4), [#allocation5], %s1101_s21 }
  0x49   : > { %896 = dma.done.wait (%p1010_p8), %s233_s4, 128  }
  0x4a   : > { %898 = vsyncadd (%p1010_p8), %s233_s4, 4294967168  ;;  %s241_s28 = sand.u32 1, %s990_s18   ;;  %s245_s11 = scalar_lea.vmem [#allocation8], %s1101_s21 }
  0x4b   : > { %s242_s30 = scalar_lea.sflag [#allocation9], %s241_s28 }
  0x4c   : > { %900 = dma.done.wait (%p1010_p8), %s242_s30, 256  }
  0x4d   : > { %902 = vsyncadd (%p1010_p8), %s242_s30, 4294967040  ;;  %vm294_vm0 = vcmask 261120   ;;  %v934_v0 = vmov 0.0   ;;  %vm935_vm1 = vmmov 0   ;;  %v297_v1 = vld [vmem:[%s245_s11] sm:$0xff]  ;;  %v296_v2 = vld [vmem:[%s236_s8] sm:$0xff] }
  0x4e   : > { %667 = vmatprep.subr.mxu0 %v934_v0  ;;  %295 = vst.msk [vmem:[#allocation4] sm:$0xff] %vm294_vm0, %v934_v0  ;;  %669 = vmatprep.mubr.msk.f32.mxu0 %vm935_vm1, %v934_v0  ;;  %vm291_vm2 = vcmask 7168   ;;  %v936_v3 = vmov -inf   ;;  %vm378_vm3 = vcmask 64512   ;;  %v937_v8 = vmov 0   ;;  %s254_s18 = scalar_lea.vmem [#allocation10], %s1101_s21 }
  0x4f   : > { %672 = vmatprep.subr.mxu1 %v934_v0  ;;  %674 = vmatprep.mubr.msk.f32.mxu1 %vm935_vm1, %v934_v0  ;;  %292 = vst.msk [vmem:[#allocation2] sm:$0xff] %vm291_vm2, %v936_v3  ;;  %293 = vst.msk [vmem:[#allocation3] sm:$0xff] %vm291_vm2, %v934_v0  ;;  %v298_v13 = vld [vmem:[%s254_s18] sm:$0xff]  ;;  %s660_s24 = sshll.u32 %s921_s15, 7  ;;  %s286_s5 = scalar_lea.vmem [#allocation11], %s1101_s21 }
  0x50   : > { %668 = vmatpush3.xpose.msk.msra.mxu0 %vm294_vm0, %v297_v1  ;;  %753 = vset.pattern.permute.xlu0 %v937_v8  ;;  %s513_s10 = sshll.u32 %s286_s5, 4  ;;  %s511_s7 = scalar_lea.hbm %s1172_s3, %s660_s24  ;;  %s514_s10 = int_to_ptr.vmem [resolvable:$true] %s513_s10 }
  0x51   : > { %754 = vset.pattern.permute.xlu1 %v937_v8  ;;  %673 = vmatpush3.msra.mxu1 %v298_v13  ;;  %s499_s19 = scalar_lea.sflag [#allocation7], %s1098_s9  ;;  %s845_s22 = scalar_lea.vmem %s514_s10, 128 }
  0x52   : > { %p846_p8 = scmp.ne.s32.totalorder %s514_s10, %s845_s22  ;;  %s938_s16 = smov [#allocation11]  }
  0x53   : > { %670 = vmatmul.mubr.msk.f32.vlgmr.msra.gmra.mxu0 %vm294_vm0, %v296_v2  ;;  %s849_s15 = sshll.u32 %s938_s16, 4  ;;  %s850_s15 = int_to_ptr.vmem [resolvable:$false] %s849_s15 }
  0x54   : > { %p847_p0 = pnand %p846_p8, %p1014_p9  ;;  %s851_s23 = scalar_lea.vmem %s850_s15, 256 }
  0x55   : > { %v402_v27 = vld [vmem:[#allocation4] sm:$0xff]  ;;  %p852_p4 = scmp.lt.s32.totalorder %s514_s10, %s850_s15  ;;  %p853_p10 = scmp.lt.s32.totalorder %s851_s23, %s845_s22 }
  0x56   : > { %v377_v9 = vld [vmem:[#allocation2] sm:$0xff]  ;;  %v394_v21 = vld [vmem:[#allocation3] sm:$0xff]  ;;  %p848_p3 = pneg %p847_p0 }
  0x57   : > { %p854_p13 = por %p853_p10, %p852_p4 }
  0x59   : > { %p855_p12 = pnand %p854_p13, %p848_p3 }
 0x113   : > { %v372_v4 = vpop.f32.mrf.mxu0 }
 0x114   : > { %v376_v5 = vmul.f32 0.17677669, %v372_v4 }
 0x115   : > { %v671_v6 = vpop.f32.mrf.mxu0 }
 0x116   : > { %v379_v7 = vsel %vm378_vm3, %v376_v5, -inf }
 0x117   : > { %380 = vmax.xlane.f32.xlu0 %v379_v7 }
 0x1a0   : > { %v381_v10 = vpop.xlane.xlu0 %380 }
 0x1a1   : > { %v382_v11 = vmax.f32 %v377_v9, %v381_v10 }
 0x1a3   : > { %v383_v12 = vsub.f32 %v377_v9, %v382_v11  ;;  %484 = vst.msk [vmem:[#allocation2] sm:$0xff] %vm291_vm2, %v382_v11  ;;  %388 = vperm.xlu0 %753, %v382_v11  }
 0x1a5   : > { %v384_v18 = vmul.f32 1.442695, %v383_v12 }
 0x21e   : > { %v389_v14 = vpop.permute.xlu0 %388 }
 0x21f   : > { %v391_v15 = vsub.f32 %v376_v5, %v389_v14 }
 0x221   : > { %v392_v16 = vmul.f32 1.442695, %v391_v15 }
 0x223   : > { %755 = vpow2.f32 %v392_v16 }
 0x224   : > { %757 = vpow2.f32 %v384_v18 }
 0x230   : > { %v756_v17 = vpop.eup %755 }
 0x231   : > { %675 = vmatmul.mubr.msk.f32.vlgmr.msra.gmra.mxu1 %vm378_vm3, %v756_v17  ;;  %v396_v19 = vsel %vm378_vm3, %v756_v17, 0.0  ;;  %v758_v20 = vpop.eup %757 }
 0x232   : > { %397 = vadd.xlane.f32.xlu1 %v396_v19  ;;  %v395_v22 = vmul.f32 %v758_v20, %v394_v21 }
 0x243   : > { %405 = vperm.xlu1 %754, %v758_v20  }
 0x2bb   : > { %v398_v23 = vpop.xlane.xlu1 %397 }
 0x2bc   : > { %v399_v24 = vadd.f32 %v398_v23, %v395_v22 }
 0x2be   : > { %401 = vst.msk [vmem:[#allocation3] sm:$0xff] %vm291_vm2, %v399_v24 }
 0x2bf   : > { %v406_v28 = vpop.permute.xlu1 %405 }
 0x2c0   : > { %v408_v29 = vmul.f32 %v406_v28, %v402_v27 }
 0x2c5   : > { %v488_v25 = vld [vmem:[#allocation3] sm:$0xff] }
 0x2c6   : > { %759 = vrcp.f32 %v488_v25 }
 0x2d3   : > { %v760_v26 = vpop.eup %759 }
 0x2d4   : > { %493 = vperm.xlu1 %754, %v760_v26  }
 0x2f1   : > { %v478_v30 = vpop.f32.mrf.mxu1 }
 0x2f2   : > { %v482_v31 = vadd.f32 %v478_v30, %v408_v29 }
 0x2f3   : > { %v676_v32 = vpop.f32.mrf.mxu1 }
 0x2f4   : > { %483 = vst.msk [vmem:[#allocation4] sm:$0xff] %vm294_vm0, %v482_v31 }
 0x2fb   : > { %v490_v33 = vld [vmem:[#allocation4] sm:$0xff] }
 0x34f   : > { %v494_v34 = vpop.permute.xlu1 %493 }
 0x350   : > { %v496_v35 = vmul.f32 %v494_v34, %v490_v33 }
 0x352   : > { %497 = vst.msk [vmem:[%s286_s5] sm:$0xff] %vm294_vm0, %v496_v35 }
 0x353   : > { %858 = shalt.err (!%p855_p12)
}
 0x354   : > { %s859_s20 = scalar_lea.hbm %s511_s7, 128  ;;  %s863_s21 = scalar_lea.hbm %s1172_s3, 256 }
 0x355   : > { %p860_p1 = scmp.ne.s32.totalorder %s511_s7, %s859_s20  ;;  %p864_p6 = scmp.lt.s32.totalorder %s511_s7, %s1172_s3 }
 0x356   : > { %p865_p7 = scmp.lt.s32.totalorder %s863_s21, %s859_s20 }
 0x357   : > { %p861_p2 = pnand %p860_p1, %p1014_p9 }
 0x358   : > { %p866_p8 = por %p865_p7, %p864_p6 }
 0x359   : > { %p862_p5 = pneg %p861_p2 }
 0x35b   : > { %p867_p0 = pnand %p866_p8, %p862_p5 }
 0x35d   : > { %870 = shalt.err (!%p867_p0)
}
 0x35e   : > { %683 = dma.vmem_to_hbm [thread:$0]  (%p1014_p9), %s514_s10, 128, %s511_s7, %s499_s19  }
 0x35f PF: > { %s525_s28 = sand.u32 1, %s909_s12   ;;  %p1187_p3 = scmp.ge.s32.totalorder %s929_s17, 2 }
 0x360   : > { %s526_s30 = scalar_lea.sflag [#allocation7], %s525_s28 }
 0x361   : > { %p696_p4 = pnand %p1187_p3, %p1021_p11 }
 0x363   : > { %p697_p10 = pneg %p696_p4 }
 0x365   : > { %904 = dma.done.wait (%p697_p10), %s526_s30, 128  }
 0x366   : > { %906 = vsyncadd (%p697_p10), %s526_s30, 4294967168  ;;  %s22_s17 = sadd.s32 1, %s929_s17   ;;  %s1188_s15 = sld [smem:[#allocation15_spill]] }
 0x367   : > { %p19_p13 = scmp.ge.s32.totalorder %s22_s17, 4   ;;  %s1189_s16 = sld [smem:[#allocation16_spill]] }
 0x368   : > { %s1190_s12 = smov %s913_s13  ;;  %s1191_s13 = smov %s917_s14 }
 0x369   : > { %s1192_s14 = smov %s1019_s26  ;;  %21 = sbr.rel (!%p19_p13) target bundleno = 10 (0xa), region = 109 }
 0x36e   :  { %531 = vsyncpa [#allocation6], 1 }
 0x36f   :  { %533 = vsyncpa [#allocation6 + $0x1], 1 }
 0x370   :  { %534 = vsyncpa [#allocation9], 1 }
 0x371   :  { %536 = vsyncpa [#allocation9 + $0x1], 1 }
 0x372   :  { %537 = vsyncpa [#allocation7], 1 }
 0x373   :  { %539 = vsyncpa [#allocation7 + $0x1], 1 }

</bundles_post_ra>
